<compile_context>
chip_gen: v5e
topology: v5e:2x2
jax: 0.10.0
libtpu: 0.0.40
codegen_flags: <defaults>
</compile_context>

<pallas_src>
import jax
import jax.numpy as jnp
import numpy as np
from jax import lax
from jax.experimental import pallas as pl
from jax.experimental.pallas import tpu as pltpu

_HALF_LOG_2PI = 0.5 * float(np.log(2.0 * np.pi))


def _round_up(a, m):
    return ((a + m - 1) // m) * m


def ais_kernel(beta_ref, b2_ref, x_ref, w1_ref, b1_ref, w2t_ref, out_ref):
    beta = beta_ref[0, 0]                                   # scalar (SMEM)
    b2 = b2_ref[0, 0]                                       # scalar (SMEM)
    x = x_ref[...]                                          # (TB, D) f32
    d = x.shape[-1]

    # --- model(x): tiny MLP energy ---------------------------------------
    h = jnp.tanh(
        jnp.dot(x, w1_ref[...], preferred_element_type=jnp.float32)
        + b1_ref[...])                                      # (TB, H)

    # (H,1) projection as a trans_b dot so the result is a lane-dense row:
    #   (1, H) . (TB, H)^T -> (1, TB)
    logpx = lax.dot_general(
        w2t_ref[...], h, (((1,), (1,)), ((), ())),
        preferred_element_type=jnp.float32) + b2            # (1, TB)

    # --- init_dist.log_prob(x).sum(-1): standard Normal -------------------
    # sum_d x^2 via a ones-row trans_b dot -> result lands directly in lanes.
    ones_row = jnp.ones((1, d), jnp.float32)
    ssq = lax.dot_general(
        ones_row, x * x, (((1,), (1,)), ((), ())),
        preferred_element_type=jnp.float32)                 # (1, TB)
    logpi = -0.5 * ssq - d * _HALF_LOG_2PI                  # (1, TB)

    # --- beta blend (hoisted form) ----------------------------------------
    out_ref[...] = logpi + beta * (logpx - logpi)           # (1, TB) lane-dense


def ais_forward(x, beta, w1, b1, w2, b2, *, tb=512):
    """x: (B, D) f32, beta scalar.  Returns (B,) f32.

    tb: batch-tile size (rows per grid step).  Forced to a multiple of 128 so
    the output block stays lane-dense; B is zero-padded to a multiple of tb.
    Default 512 is VMEM-safe on v5e/v6e/v7x (x tile: 512*128lanes*4B*2buf ~ 0.5 MiB).
    """
    B, D = x.shape
    H = w1.shape[1]

    tb = max(128, min(int(tb), _round_up(B, 128)))
    tb = _round_up(tb, 128)
    B_pad = _round_up(B, tb)
    if B_pad != B:
        x = jnp.pad(x, ((0, B_pad - B), (0, 0)))
    grid = (B_pad // tb,)

    beta_arr = jnp.asarray(beta, jnp.float32).reshape(1, 1)
    b2_arr = jnp.asarray(b2, jnp.float32).reshape(1, 1)
    w2t = jnp.asarray(w2, jnp.float32).reshape(1, H)        # (H,1) -> (1,H)

    out = pl.pallas_call(
        ais_kernel,
        out_shape=jax.ShapeDtypeStruct((1, B_pad), jnp.float32),
        grid=grid,
        in_specs=[
            pl.BlockSpec(memory_space=pltpu.SMEM),          # beta (1,1)
            pl.BlockSpec(memory_space=pltpu.SMEM),          # b2   (1,1)
            pl.BlockSpec((tb, D), lambda i: (i, 0)),        # x: streamed tiles
            pl.BlockSpec((D, H), lambda i: (0, 0)),         # w1: resident
            pl.BlockSpec((1, H), lambda i: (0, 0)),         # b1: resident
            pl.BlockSpec((1, H), lambda i: (0, 0)),         # w2^T: resident
        ],
        out_specs=pl.BlockSpec((1, tb), lambda i: (0, i)),  # lane-dense row slab
        compiler_params=pltpu.CompilerParams(
            dimension_semantics=("parallel",)),
    )(beta_arr, b2_arr, x, w1, b1, w2t)

    return out[0, :B]                                       # drop pad + squeeze


def ais_reference(x, beta, w1, b1, w2, b2):
    h = jnp.tanh(x @ w1 + b1)
    logpx = (h @ w2 + b2)[:, 0]
    logpi = jnp.sum(-0.5 * x * x - _HALF_LOG_2PI, axis=-1)
    return logpx * beta + logpi * (1.0 - beta)


if __name__ == "__main__":
    # Small shapes; B=300 is deliberately not a tile multiple so the padding
    # path and a 3-step grid (tb=128) are both exercised.
    B, D, H = 300, 32, 32
    key = jax.random.PRNGKey(0)
    kx, k1, k2, k3, k4 = jax.random.split(key, 5)

    x = jax.random.normal(kx, (B, D), dtype=jnp.float32)
    w1 = jax.random.normal(k1, (D, H), dtype=jnp.float32) * (1.0 / np.sqrt(D))
    b1 = jax.random.normal(k2, (1, H), dtype=jnp.float32) * 0.1
    w2 = jax.random.normal(k3, (H, 1), dtype=jnp.float32) * (1.0 / np.sqrt(H))
    b2 = jax.random.normal(k4, (1, 1), dtype=jnp.float32) * 0.1
    beta = 0.3

    out = ais_forward(x, beta, w1, b1, w2, b2, tb=128)
    jax.block_until_ready(out)

    ref = ais_reference(x, beta, w1, b1, w2, b2)
    np.testing.assert_allclose(np.asarray(out), np.asarray(ref),
                               rtol=1e-5, atol=1e-4)
    print("KERNEL_OK")
</pallas_src>

<mosaic_0001>
module attributes {stable_mosaic.version = 11 : i64} {
  func.func @ais_kernel(%arg0: i32, %arg1: memref<1x1xf32, #tpu.memory_space<smem>>, %arg2: memref<1x1xf32, #tpu.memory_space<smem>>, %arg3: memref<128x32xf32, #tpu.memory_space<vmem>>, %arg4: memref<32x32xf32, #tpu.memory_space<vmem>>, %arg5: memref<1x32xf32, #tpu.memory_space<vmem>>, %arg6: memref<1x32xf32, #tpu.memory_space<vmem>>, %arg7: memref<1x128xf32, #tpu.memory_space<vmem>>) attributes {dimension_semantics = [#tpu.dimension_semantics<parallel>], iteration_bounds = array<i64: 3>, scalar_prefetch = 0 : i64, scratch_operands = 0 : i64, tpu.core_type = #tpu.core_type<tc>, window_params = [{transform_indices = @transform_0, window_bounds = array<i64: 1, 1>}, {transform_indices = @transform_1, window_bounds = array<i64: 1, 1>}, {transform_indices = @transform_2, window_bounds = array<i64: 128, 32>}, {pipeline_mode = #tpu.pipeline_mode<synchronous>, transform_indices = @transform_3, window_bounds = array<i64: 32, 32>}, {pipeline_mode = #tpu.pipeline_mode<synchronous>, transform_indices = @transform_4, window_bounds = array<i64: 1, 32>}, {pipeline_mode = #tpu.pipeline_mode<synchronous>, transform_indices = @transform_5, window_bounds = array<i64: 1, 32>}, {transform_indices = @transform_6, window_bounds = array<i64: 1, 128>}]} {
    %c0 = arith.constant 0 : index
    %c0_0 = arith.constant 0 : index
    %0 = memref.load %arg1[%c0, %c0_0] : memref<1x1xf32, #tpu.memory_space<smem>>
    %c0_1 = arith.constant 0 : index
    %c0_2 = arith.constant 0 : index
    %1 = memref.load %arg2[%c0_1, %c0_2] : memref<1x1xf32, #tpu.memory_space<smem>>
    %c0_3 = arith.constant 0 : index
    %c0_4 = arith.constant 0 : index
    %2 = vector.load %arg3[%c0_3, %c0_4] : memref<128x32xf32, #tpu.memory_space<vmem>>, vector<128x32xf32>
    %c0_5 = arith.constant 0 : index
    %c0_6 = arith.constant 0 : index
    %3 = vector.load %arg4[%c0_5, %c0_6] : memref<32x32xf32, #tpu.memory_space<vmem>>, vector<32x32xf32>
    %cst = arith.constant dense<0.000000e+00> : vector<128x32xf32>
    %4 = tpu.matmul %2, %3, %cst {dimension_numbers = #tpu.dot_dimension_numbers<[1], [0], [0], [1], [0, 0, 1, 1], [], []>} : vector<128x32xf32>, vector<32x32xf32>, vector<128x32xf32> -> vector<128x32xf32>
    %c0_7 = arith.constant 0 : index
    %c0_8 = arith.constant 0 : index
    %5 = vector.load %arg5[%c0_7, %c0_8] : memref<1x32xf32, #tpu.memory_space<vmem>>, vector<1x32xf32>
    %6 = vector.broadcast %5 : vector<1x32xf32> to vector<128x32xf32>
    %7 = arith.addf %4, %6 : vector<128x32xf32>
    %8 = math.tanh %7 : vector<128x32xf32>
    %c0_9 = arith.constant 0 : index
    %c0_10 = arith.constant 0 : index
    %9 = vector.load %arg6[%c0_9, %c0_10] : memref<1x32xf32, #tpu.memory_space<vmem>>, vector<1x32xf32>
    %cst_11 = arith.constant dense<0.000000e+00> : vector<1x128xf32>
    %10 = tpu.matmul %9, %8, %cst_11 {dimension_numbers = #tpu.dot_dimension_numbers<[1], [1], [0], [0], [0, 0, 1, 0], [], []>} : vector<1x32xf32>, vector<128x32xf32>, vector<1x128xf32> -> vector<1x128xf32>
    %11 = vector.broadcast %1 : f32 to vector<1x128xf32>
    %12 = arith.addf %10, %11 : vector<1x128xf32>
    %cst_12 = arith.constant 1.000000e+00 : f32
    %13 = vector.broadcast %cst_12 : f32 to vector<1x32xf32>
    %14 = arith.mulf %2, %2 : vector<128x32xf32>
    %cst_13 = arith.constant dense<0.000000e+00> : vector<1x128xf32>
    %15 = tpu.matmul %13, %14, %cst_13 {dimension_numbers = #tpu.dot_dimension_numbers<[1], [1], [0], [0], [0, 0, 1, 0], [], []>} : vector<1x32xf32>, vector<128x32xf32>, vector<1x128xf32> -> vector<1x128xf32>
    %cst_14 = arith.constant -5.000000e-01 : f32
    %16 = vector.broadcast %cst_14 : f32 to vector<1x128xf32>
    %17 = arith.mulf %16, %15 : vector<1x128xf32>
    %cst_15 = arith.constant 29.4060326 : f32
    %18 = vector.broadcast %cst_15 : f32 to vector<1x128xf32>
    %19 = arith.subf %17, %18 : vector<1x128xf32>
    %20 = arith.subf %12, %19 : vector<1x128xf32>
    %21 = vector.broadcast %0 : f32 to vector<1x128xf32>
    %22 = arith.mulf %21, %20 : vector<1x128xf32>
    %23 = arith.addf %19, %22 : vector<1x128xf32>
    %c0_16 = arith.constant 0 : index
    %c0_17 = arith.constant 0 : index
    %24 = vector.load %arg7[%c0_16, %c0_17] : memref<1x128xf32, #tpu.memory_space<vmem>>, vector<1x128xf32>
    tpu.vector_store %arg7[%c0_16, %c0_17], %23 {strides = array<i32>} : memref<1x128xf32, #tpu.memory_space<vmem>>, vector<1x128xf32>,
    return
  }
  func.func @transform_0(%arg0: i32) -> (i32, i32) {
    %c0_i32 = arith.constant 0 : i32
    %c0_i32_0 = arith.constant 0 : i32
    %c0_i32_1 = arith.constant 0 : i32
    return %c0_i32, %c0_i32_0 : i32, i32
  }
  func.func @transform_1(%arg0: i32) -> (i32, i32) {
    %c0_i32 = arith.constant 0 : i32
    %c0_i32_0 = arith.constant 0 : i32
    %c0_i32_1 = arith.constant 0 : i32
    return %c0_i32, %c0_i32_0 : i32, i32
  }
  func.func @transform_2(%arg0: i32) -> (i32, i32) {
    %c0_i32 = arith.constant 0 : i32
    %c0_i32_0 = arith.constant 0 : i32
    return %arg0, %c0_i32 : i32, i32
  }
  func.func @transform_3(%arg0: i32) -> (i32, i32) {
    %c0_i32 = arith.constant 0 : i32
    %c0_i32_0 = arith.constant 0 : i32
    %c0_i32_1 = arith.constant 0 : i32
    return %c0_i32, %c0_i32_0 : i32, i32
  }
  func.func @transform_4(%arg0: i32) -> (i32, i32) {
    %c0_i32 = arith.constant 0 : i32
    %c0_i32_0 = arith.constant 0 : i32
    %c0_i32_1 = arith.constant 0 : i32
    return %c0_i32, %c0_i32_0 : i32, i32
  }
  func.func @transform_5(%arg0: i32) -> (i32, i32) {
    %c0_i32 = arith.constant 0 : i32
    %c0_i32_0 = arith.constant 0 : i32
    %c0_i32_1 = arith.constant 0 : i32
    return %c0_i32, %c0_i32_0 : i32, i32
  }
  func.func @transform_6(%arg0: i32) -> (i32, i32) {
    %c0_i32 = arith.constant 0 : i32
    %c0_i32_0 = arith.constant 0 : i32
    return %c0_i32, %arg0 : i32, i32
  }
}

</mosaic_0001>

<bundles_post_ra>
// kernel: tpu_custom_call.1
= control target key start
LH: loop header
LB: loop body
LE: loop exit
PB: predicated region body
PF: predicated region fallthrough
CT: control target
= control target key end

     0   :  { %s1115_s0 = inlined_call_operand.<no memory space> [shape: f32[1,1], index: 0, kind: input, shape index: {}]   ;;  %s1116_s1 = inlined_call_operand.<no memory space> [shape: f32[1,1], index: 1, kind: input, shape index: {}]   ;;  %s1117_s2 = inlined_call_operand.vmem [shape: f32[384,32], index: 2, kind: input, shape index: {}]   ;;  %s1118_s3 = inlined_call_operand.vmem [shape: f32[32,32], index: 3, kind: input, shape index: {}]   ;;  %s1119_s4 = inlined_call_operand.vmem [shape: f32[1,32], index: 4, kind: input, shape index: {}]   ;;  %s1120_s5 = inlined_call_operand.vmem [shape: f32[1,32], index: 5, kind: input, shape index: {}]   ;;  %s1121_s6 = inlined_call_operand.hbm [shape: f32[1,384], index: 6, kind: output, shape index: {}]  }
   0x1   :  { %11 = sst [smem:[#allocation2]] %s1115_s0 }
   0x2   :  { %12 = sst [smem:[#allocation3]] %s1116_s1 }
   0x3   :  { %13 = vsyncpa [#allocation5], 0 }
   0x4   :  { %15 = vsyncpa [#allocation5 + $0x1], 0  ;;  %s886_s25 = smov 0   ;;  %s888_s26 = smov 0  }
   0x5   :  { %s890_s27 = smov 0   ;;  %s892_s28 = smov 0  }
   0x6 LB: > { %s907_s0 = sadd.s32 4294967295, %s842_s28   ;;  %s644_s1 = sadd.s32 4294967294, %s842_s28   ;;  %s842_s28 = sphi %s892_s28, %s1127_s28   ;;  %s838_s27 = sphi %s890_s27, %s1126_s27   ;;  %s834_s26 = sphi %s888_s26, %s1125_s26   ;;  %s830_s25 = sphi %s886_s25, %s1124_s25  }
   0x7   : > { %s911_s29 = sadd.s32 1, %s842_s28   ;;  %s159_s30 = sadd.s32 1, %s838_s27 }
   0x8   : > { %s156_s7 = ssub.s32 %s842_s28, %s911_s29  ;;  %p169_p0 = scmp.ne.s32.totalorder %s838_s27, %s834_s26 }
   0x9   : > { %p157_p1 = scmp.eq.s32.totalorder %s156_s7, 0  ;;  %p170_p2 = scmp.eq.s32.totalorder %s907_s0, 2 }
   0xa   : > { %p175_p3 = scmp.ne.s32.totalorder %s834_s26, %s830_s25  ;;  %p176_p4 = scmp.eq.s32.totalorder %s644_s1, 2 }
   0xb   : > { %s922_s8 = scalar_select %p157_p1, %s838_s27, %s159_s30  }
   0xc   : > { %p924_p5 = por %p170_p2, %p169_p0  ;;  %p928_p6 = por %p176_p4, %p175_p3 }
   0xd   : > { %p647_p7 = scmp.ge.s32.totalorder %s842_s28, 1  ;;  %p218_p8 = scmp.lt.s32.totalorder %s842_s28, 4 }
   0xf   : > { %p219_p9 = pnand %p647_p7, %p218_p8 }
  0x10   : > { %s648_s15 = sshll.u32 (!%p219_p9), %s907_s0, 4  ;;  %s254_s11 = sld [smem:[#allocation3]] (!%p219_p9) }
  0x11   : > { %222 = sbr.rel (%p219_p9) target bundleno = 427 (0x1ab), region = 44  ;;  %p248_p10 = scmp.lt.s32.totalorder (!%p219_p9), %s648_s15, 47 }
  0x12   : > { %s253_s12 = sld [smem:[#allocation2]] (!%p219_p9)  ;;  %s245_s13 = sand.u32 (!%p219_p9), 1, %s834_s26  }
  0x13   : > { %s585_s16 = scalar_lea.hbm (!%p219_p9), %s1121_s6, %s907_s0  ;;  %s246_s17 = scalar_lea.vmem (!%p219_p9), [#allocation4], %s245_s13 }
  0x14   : > { %s587_s18 = sshll.u32 (!%p219_p9), %s246_s17, 4  ;;  %s589_s19 = sshll.u32 (!%p219_p9), %s585_s16, 4  ;;  %s588_s18 = int_to_ptr.vmem [resolvable:$true] %s587_s18  ;;  %s590_s19 = int_to_ptr.hbm [resolvable:$true] %s589_s19 }
  0x15   : > { %s794_s21 = sshra.s32 (!%p219_p9), %s590_s19, 4  ;;  %s800_s24 = scalar_lea.hbm (!%p219_p9), %s1121_s6, 3  ;;  %s795_s21 = int_to_ptr.hbm [resolvable:$true] %s794_s21 }
  0x16   : > { %v274_v0 = vld [vmem:[%s1118_s3 + $0x18] sm:$0xff]  ;;  %v273_v1 = vld [vmem:[%s1118_s3 + $0x10] sm:$0xff]  ;;  %v272_v2 = vld [vmem:[%s1118_s3 + $0x8] sm:$0xff]  ;;  %s1129_s15 = smov (!%p248_p10, %s648_s15), 47  ;;  %vm279_vm0 = vcmask 261120   ;;  %s796_s22 = scalar_lea.hbm %s795_s21, 1 }
  0x17   : > { %703 = vmatpush.msra.mxu3 %v274_v0  ;;  %340 = vmatpush.msra.mxu0 %v274_v0  ;;  %v271_v3 = vld [vmem:[%s1118_s3] sm:$0xff]  ;;  %s649_s20 = sshll.u32 %s1129_s15, 3  ;;  %p797_p11 = scmp.ne.s32.totalorder %s795_s21, %s796_s22 }
  0x18   : > { %s950_s23 = scalar_lea.vmem %s1117_s2, %s649_s20  ;;  %v1021_v41 = vld [vmem:[%s1119_s4] ss:$0 sm:$0xff]  ;;  %s577_s20 = scalar_lea.sflag [#allocation5], %s245_s13 }
  0x19   : > { %704 = vmatpush.msra.mxu3 %v273_v1  ;;  %341 = vmatpush.msra.mxu0 %v273_v1  ;;  %v263_v4 = vld [vmem:[%s950_s23 + $0x40] sm:$0xff]  ;;  %v264_v6 = vld [vmem:[%s950_s23 + $0x48] sm:$0xff]  ;;  %v265_v8 = vld [vmem:[%s950_s23 + $0x50] sm:$0xff]  ;;  %p798_p12 = pnand %p797_p11, %p924_p5  ;;  %p801_p0 = scmp.lt.s32.totalorder %s795_s21, %s1121_s6 }
  0x1a   : > { %v955_v5 = vld [vmem:[%s950_s23] sm:$0xff]  ;;  %v962_v7 = vld [vmem:[%s950_s23 + $0x8] sm:$0xff]  ;;  %v969_v9 = vld [vmem:[%s950_s23 + $0x10] sm:$0xff]  ;;  %v492_v34 = vmul.f32 %v265_v8, %v265_v8  ;;  %v491_v36 = vmul.f32 %v264_v6, %v264_v6  ;;  %v490_v38 = vmul.f32 %v263_v4, %v263_v4  ;;  %p802_p1 = scmp.lt.s32.totalorder %s800_s24, %s796_s22 }
  0x1b   : > { %705 = vmatpush.msra.mxu3 %v272_v2  ;;  %342 = vmatpush.msra.mxu0 %v272_v2  ;;  %v266_v10 = vld [vmem:[%s950_s23 + $0x58] sm:$0xff]  ;;  %v267_v12 = vld [vmem:[%s950_s23 + $0x60] sm:$0xff]  ;;  %v268_v14 = vld [vmem:[%s950_s23 + $0x68] sm:$0xff]  ;;  %v484_v57 = vmul.f32 %v969_v9, %v969_v9  ;;  %v483_v60 = vmul.f32 %v962_v7, %v962_v7  ;;  %v482_v63 = vmul.f32 %v955_v5, %v955_v5  ;;  %p799_p13 = pneg %p798_p12 }
  0x1c   : > { %v976_v11 = vld [vmem:[%s950_s23 + $0x18] sm:$0xff]  ;;  %v259_v13 = vld [vmem:[%s950_s23 + $0x20] sm:$0xff]  ;;  %v260_v15 = vld [vmem:[%s950_s23 + $0x28] sm:$0xff]  ;;  %v495_v28 = vmul.f32 %v268_v14, %v268_v14  ;;  %v494_v31 = vmul.f32 %v267_v12, %v267_v12  ;;  %v493_v32 = vmul.f32 %v266_v10, %v266_v10  ;;  %p803_p2 = por %p802_p1, %p801_p0 }
  0x1d   : > { %706 = vmatpush.msra.mxu3 %v271_v3  ;;  %343 = vmatpush.msra.mxu0 %v271_v3  ;;  %v269_v16 = vld [vmem:[%s950_s23 + $0x70] sm:$0xff]  ;;  %v270_v18 = vld [vmem:[%s950_s23 + $0x78] sm:$0xff]  ;;  %v487_v46 = vmul.f32 %v260_v15, %v260_v15  ;;  %v486_v50 = vmul.f32 %v259_v13, %v259_v13  ;;  %v485_v53 = vmul.f32 %v976_v11, %v976_v11 }
  0x1e   : > { %658 = vmatmul.msk.f32.vlgmr.msra.gmra.mxu3 %vm279_vm0, %v263_v4  ;;  %650 = vmatmul.msk.f32.vlgmr.msra.gmra.mxu0 %vm279_vm0, %v955_v5  ;;  %v261_v17 = vld [vmem:[%s950_s23 + $0x30] sm:$0xff]  ;;  %v262_v19 = vld [vmem:[%s950_s23 + $0x38] sm:$0xff]  ;;  %v497_v26 = vmul.f32 %v270_v18, %v270_v18  ;;  %v496_v27 = vmul.f32 %v269_v16, %v269_v16  ;;  %v844_v5 = vmov 1.0   ;;  %p804_p3 = pnand %p803_p2, %p799_p13 }
  0x1f   : > { %v489_v40 = vmul.f32 %v262_v19, %v262_v19  ;;  %v488_v44 = vmul.f32 %v261_v17, %v261_v17 }
  0x20   : > { %683 = vmatpush.xpose.msk.msra.mxu2 %vm279_vm0, %v497_v26 }
  0x24   : > { %684 = vmatpush.xpose.msk.msra.mxu2 %vm279_vm0, %v496_v27 }
  0x26   : > { %659 = vmatmul.msk.f32.gmra.mxu3 %vm279_vm0, %v264_v6  ;;  %651 = vmatmul.msk.f32.gmra.mxu0 %vm279_vm0, %v962_v7 }
  0x28   : > { %685 = vmatpush.xpose.msk.msra.mxu2 %vm279_vm0, %v495_v28 }
  0x2c   : > { %686 = vmatpush.xpose.msk.msra.mxu2 %vm279_vm0, %v494_v31 }
  0x2e   : > { %660 = vmatmul.msk.f32.gmra.mxu3 %vm279_vm0, %v265_v8  ;;  %652 = vmatmul.msk.f32.gmra.mxu0 %vm279_vm0, %v969_v9 }
  0x30   : > { %687 = vmatpush.xpose.msk.msra.mxu2 %vm279_vm0, %v493_v32 }
  0x34   : > { %688 = vmatpush.xpose.msk.msra.mxu2 %vm279_vm0, %v492_v34 }
  0x36   : > { %661 = vmatmul.msk.f32.gmra.mxu3 %vm279_vm0, %v266_v10  ;;  %653 = vmatmul.msk.f32.gmra.mxu0 %vm279_vm0, %v976_v11 }
  0x38   : > { %689 = vmatpush.xpose.msk.msra.mxu2 %vm279_vm0, %v491_v36 }
  0x3c   : > { %690 = vmatpush.xpose.msk.msra.mxu2 %vm279_vm0, %v490_v38 }
  0x3e   : > { %662 = vmatmul.msk.f32.gmra.mxu3 %vm279_vm0, %v267_v12  ;;  %654 = vmatmul.msk.f32.gmra.mxu0 %vm279_vm0, %v259_v13 }
  0x40   : > { %691 = vmatpush.xpose.msk.msra.mxu2 %vm279_vm0, %v489_v40 }
  0x44   : > { %692 = vmatpush.xpose.msk.msra.mxu2 %vm279_vm0, %v488_v44 }
  0x46   : > { %663 = vmatmul.msk.f32.gmra.mxu3 %vm279_vm0, %v268_v14  ;;  %655 = vmatmul.msk.f32.gmra.mxu0 %vm279_vm0, %v260_v15 }
  0x48   : > { %693 = vmatpush.xpose.msk.msra.mxu2 %vm279_vm0, %v487_v46 }
  0x4c   : > { %694 = vmatpush.xpose.msk.msra.mxu2 %vm279_vm0, %v486_v50 }
  0x4e   : > { %664 = vmatmul.msk.f32.gmra.mxu3 %vm279_vm0, %v269_v16  ;;  %656 = vmatmul.msk.f32.gmra.mxu0 %vm279_vm0, %v261_v17 }
  0x50   : > { %695 = vmatpush.xpose.msk.msra.mxu2 %vm279_vm0, %v485_v53 }
  0x54   : > { %696 = vmatpush.xpose.msk.msra.mxu2 %vm279_vm0, %v484_v57 }
  0x56   : > { %665 = vmatmul.msk.f32.gmra.mxu3 %vm279_vm0, %v270_v18  ;;  %657 = vmatmul.msk.f32.gmra.mxu0 %vm279_vm0, %v262_v19 }
  0x58   : > { %697 = vmatpush.xpose.msk.msra.mxu2 %vm279_vm0, %v483_v60 }
  0x5c   : > { %698 = vmatpush.xpose.msk.msra.mxu2 %vm279_vm0, %v482_v63 }
  0x5f   : > { %699 = vmatmul.msk.f32.vlgmr.msra.gmra.mxu2 %vm279_vm0, %v844_v5 }
  0x9b   : > { %v1000_v22 = vpop.f32.mrf.mxu0 }
  0x9c   : > { %v346_v18 = vadd.f32 %v1021_v41, %v1000_v22 }
  0xa1   : > { %v996_v20 = vpop.f32.mrf.mxu3 }
  0xa2   : > { %v370_v1 = vadd.f32 %v1021_v41, %v996_v20 }
  0xa3   : > { %v1002_v24 = vpop.f32.mrf.mxu0 }
  0xa4   : > { %v349_v16 = vadd.f32 %v1021_v41, %v1002_v24 }
  0xa9   : > { %v998_v21 = vpop.f32.mrf.mxu3 }
  0xaa   : > { %v373_v61 = vadd.f32 %v1021_v41, %v998_v21 }
  0xab   : > { %v1006_v30 = vpop.f32.mrf.mxu0 }
  0xac   : > { %v352_v14 = vadd.f32 %v1021_v41, %v1006_v30 }
  0xb1   : > { %v375_v23 = vpop.f32.mrf.mxu3 }
  0xb2   : > { %v376_v58 = vadd.f32 %v1021_v41, %v375_v23  ;;  %v409_v23 = vld [vmem:[%s1120_s5] sm:$0x1] }
  0xb3   : > { %v1010_v35 = vpop.f32.mrf.mxu0 }
  0xb4   : > { %v355_v12 = vadd.f32 %v1021_v41, %v1010_v35 }
  0xb9   : > { %v378_v25 = vpop.f32.mrf.mxu3 }
  0xba   : > { %v379_v54 = vadd.f32 %v1021_v41, %v378_v25  ;;  %v410_v25 = vstv %s254_s11 }
  0xbb   : > { %v1015_v39 = vpop.f32.mrf.mxu0 }
  0xbc   : > { %v358_v10 = vadd.f32 %v1021_v41, %v1015_v39 }
  0xc1   : > { %v381_v29 = vpop.f32.mrf.mxu3 }
  0xc2   : > { %v382_v51 = vadd.f32 %v1021_v41, %v381_v29  ;;  %v572_v29 = vstv %s253_s12 }
  0xc3   : > { %v360_v47 = vpop.f32.mrf.mxu0 }
  0xc4   : > { %v361_v9 = vadd.f32 %v1021_v41, %v360_v47 }
  0xc9   : > { %v384_v33 = vpop.f32.mrf.mxu3 }
  0xca   : > { %v385_v48 = vadd.f32 %v1021_v41, %v384_v33 }
  0xcb   : > { %v363_v55 = vpop.f32.mrf.mxu0 }
  0xcc   : > { %v364_v6 = vadd.f32 %v1021_v41, %v363_v55 }
  0xd1   : > { %v387_v37 = vpop.f32.mrf.mxu3 }
  0xd2   : > { %v388_v45 = vadd.f32 %v1021_v41, %v387_v37 }
  0xd3   : > { %v366_v0 = vpop.f32.mrf.mxu0 }
  0xd4   : > { %v367_v3 = vadd.f32 %v1021_v41, %v366_v0 }
  0xd9   : > { %v390_v42 = vpop.f32.mrf.mxu3 }
  0xda   : > { %v391_v43 = vadd.f32 %v1021_v41, %v390_v42 }
  0xdc   : > { %748 = vtanh.f32 %v391_v43 }
  0xdd   : > { %750 = vtanh.f32 %v388_v45 }
  0xde   : > { %752 = vtanh.f32 %v385_v48 }
  0xdf   : > { %754 = vtanh.f32 %v382_v51 }
  0xe0   : > { %756 = vtanh.f32 %v379_v54 }
  0xe1   : > { %758 = vtanh.f32 %v376_v58 }
  0xe2   : > { %v749_v49 = vpop.eup %748  ;;  %760 = vtanh.f32 %v373_v61  ;;  %v566_v22 = vpop.f32.mrf.mxu2 }
  0xe3   : > { %666 = vmatpush.xpose.msk.msra.mxu1 %vm279_vm0, %v749_v49  ;;  %v751_v52 = vpop.eup %750  ;;  %762 = vtanh.f32 %v370_v1  ;;  %v569_v24 = vmul.f32 -0.5, %v566_v22 }
  0xe4   : > { %v753_v56 = vpop.eup %752  ;;  %764 = vtanh.f32 %v367_v3 }
  0xe5   : > { %v755_v59 = vpop.eup %754  ;;  %766 = vtanh.f32 %v364_v6  ;;  %v700_v26 = vadd.f32 -29.406033, %v569_v24 }
  0xe6   : > { %v757_v62 = vpop.eup %756  ;;  %768 = vtanh.f32 %v361_v9 }
  0xe7   : > { %667 = vmatpush.xpose.msk.msra.mxu1 %vm279_vm0, %v751_v52  ;;  %v759_v2 = vpop.eup %758  ;;  %770 = vtanh.f32 %v358_v10 }
  0xe8   : > { %v761_v4 = vpop.eup %760  ;;  %772 = vtanh.f32 %v355_v12 }
  0xe9   : > { %v763_v7 = vpop.eup %762  ;;  %774 = vtanh.f32 %v352_v14 }
  0xea   : > { %v765_v8 = vpop.eup %764  ;;  %776 = vtanh.f32 %v349_v16 }
  0xeb   : > { %668 = vmatpush.xpose.msk.msra.mxu1 %vm279_vm0, %v753_v56  ;;  %v767_v11 = vpop.eup %766  ;;  %778 = vtanh.f32 %v346_v18 }
  0xec   : > { %v769_v13 = vpop.eup %768 }
  0xed   : > { %v771_v15 = vpop.eup %770 }
  0xee   : > { %v773_v17 = vpop.eup %772 }
  0xef   : > { %669 = vmatpush.xpose.msk.msra.mxu1 %vm279_vm0, %v755_v59  ;;  %v775_v19 = vpop.eup %774 }
  0xf0   : > { %v777_v20 = vpop.eup %776 }
  0xf1   : > { %v779_v21 = vpop.eup %778 }
  0xf3   : > { %670 = vmatpush.xpose.msk.msra.mxu1 %vm279_vm0, %v757_v62 }
  0xf7   : > { %671 = vmatpush.xpose.msk.msra.mxu1 %vm279_vm0, %v759_v2 }
  0xfb   : > { %672 = vmatpush.xpose.msk.msra.mxu1 %vm279_vm0, %v761_v4 }
  0xff   : > { %673 = vmatpush.xpose.msk.msra.mxu1 %vm279_vm0, %v763_v7 }
 0x103   : > { %674 = vmatpush.xpose.msk.msra.mxu1 %vm279_vm0, %v765_v8 }
 0x107   : > { %675 = vmatpush.xpose.msk.msra.mxu1 %vm279_vm0, %v767_v11 }
 0x10b   : > { %676 = vmatpush.xpose.msk.msra.mxu1 %vm279_vm0, %v769_v13 }
 0x10f   : > { %677 = vmatpush.xpose.msk.msra.mxu1 %vm279_vm0, %v771_v15 }
 0x113   : > { %678 = vmatpush.xpose.msk.msra.mxu1 %vm279_vm0, %v773_v17 }
 0x117   : > { %679 = vmatpush.xpose.msk.msra.mxu1 %vm279_vm0, %v775_v19 }
 0x11b   : > { %680 = vmatpush.xpose.msk.msra.mxu1 %vm279_vm0, %v777_v20 }
 0x11f   : > { %681 = vmatpush.xpose.msk.msra.mxu1 %vm279_vm0, %v779_v21 }
 0x122   : > { %682 = vmatmul.msk.f32.vlgmr.msra.gmra.mxu1 %vm279_vm0, %v409_v23 }
 0x19f   : > { %v479_v27 = vpop.f32.mrf.mxu1 }
 0x1a0   : > { %v480_v28 = vadd.f32 %v479_v27, %v410_v25 }
 0x1a2   : > { %v571_v30 = vsub.f32 %v480_v28, %v700_v26 }
 0x1a4   : > { %v573_v31 = vmul.f32 %v572_v29, %v571_v30 }
 0x1a6   : > { %v574_v32 = vadd.f32 %v700_v26, %v573_v31 }
 0x1a8   : > { %575 = vst [vmem:[%s246_s17] sm:$0x1] %v574_v32 }
 0x1a9   : > { %807 = shalt.err (!%p804_p3)
}
 0x1aa   : > { %707 = dma.vmem_to_hbm [thread:$0]  (%p924_p5), %s588_s18, 16, %s590_s19, %s577_s20  }
 0x1ab PF: > { %p713_p4 = scmp.ge.s32.totalorder %s842_s28, 2  ;;  %s601_s7 = sand.u32 1, %s830_s25  }
 0x1ac   : > { %s602_s11 = scalar_lea.sflag [#allocation5], %s601_s7 }
 0x1ad   : > { %p710_p7 = pnand %p713_p4, %p928_p6 }
 0x1af   : > { %p711_p8 = pneg %p710_p7 }
 0x1b1   : > { %825 = dma.done.wait (%p711_p8), %s602_s11, 16  }
 0x1b2   : > { %827 = vsyncadd (%p711_p8), %s602_s11, 4294967280  ;;  %p18_p9 = scmp.ge.s32.totalorder %s911_s29, 5   ;;  %s1124_s25 = smov %s834_s26 }
 0x1b3   : > { %s1125_s26 = smov %s838_s27  ;;  %s1126_s27 = smov %s922_s8 }
 0x1b4   : > { %s1127_s28 = smov %s911_s29  ;;  %20 = sbr.rel (!%p18_p9) target bundleno = 6 (0x6), region = 79 }
 0x1b9   :  { %607 = vsyncpa [#allocation5], 1 }
 0x1ba   :  { %609 = vsyncpa [#allocation5 + $0x1], 1 }

</bundles_post_ra>
